<compile_context>
chip_gen: v6e
topology: v6e:2x2x1
jax: 0.10.0
libtpu: 0.0.40
codegen_flags: <defaults>
</compile_context>

<pallas_src>
import functools

import jax
import jax.numpy as jnp
from jax.experimental import pallas as pl
from jax.experimental.pallas import tpu as pltpu


def _soft_split_kernel(x_ref, w_ref, b_ref, o_ref, *, k, th, w_out, c):
    # x_ref: (1, Hp, Wp, C)   padded NHWC image for one batch element
    # w_ref: (k*k, C, c2)     permuted Linear weight
    # b_ref: (1, c2)          bias
    # o_ref: (1, TH*W_out, c2) output tile (TH output rows)
    t = pl.program_id(1)
    row0 = t * th                                   # stride == 1
    p = th * w_out
    c2 = o_ref.shape[-1]
    acc = jnp.zeros((p, c2), jnp.float32)
    for i in range(k):                              # static, unrolled (k*k iters)
        for j in range(k):
            slab = x_ref[0, pl.ds(row0 + i, th), pl.ds(j, w_out), :]  # (th, w_out, C)
            acc = acc + jnp.dot(slab.reshape(p, c), w_ref[i * k + j],
                                preferred_element_type=jnp.float32)
    o_ref[0, :, :] = (acc + b_ref[...].astype(jnp.float32)).astype(o_ref.dtype)


def _choose_th(h_out, w_out):
    # Target ~1024 output positions per tile; th must divide h_out and keep
    # the output block's sublane dim a multiple of 8.
    th = min(h_out, max(1, 1024 // max(w_out, 1)))
    while h_out % th:
        th -= 1
    if th < h_out and (th * w_out) % 8 != 0:
        th = h_out                                   # fall back: whole image per tile
    return th


def soft_split(x, weight, bias, *, k=3, s=1, th=None):
    """Pallas SoftSplit. x: (N, C, H, W); weight: (C*k*k, c2); bias: (c2,)."""
    assert s == 1, "stride > 1 not implemented in the Pallas kernel"
    # TODO(synk): support stride > 1 (needs strided slab gather in the kernel).
    n, c, h, w = x.shape
    ckk, c2 = weight.shape
    assert ckk == c * k * k
    pad = (k - 1) // 2
    h_out = (h + 2 * pad - k) // s + 1
    w_out = (w + 2 * pad - k) // s + 1
    l = h_out * w_out

    if th is None:
        th = _choose_th(h_out, w_out)
    assert h_out % th == 0

    # NCHW -> padded NHWC (lane-dense channel / contraction dim); cheap XLA ops.
    xp = jnp.pad(jnp.transpose(x, (0, 2, 3, 1)),
                 ((0, 0), (pad, pad), (pad, pad), (0, 0)))
    hp, wp = h + 2 * pad, w + 2 * pad
    # (C*k*k, c2) -> (k*k, C, c2): each (i, j) weight slice is a static 0-cost view.
    w_perm = jnp.transpose(weight.reshape(c, k * k, c2), (1, 0, 2))
    b2 = bias.reshape(1, c2)

    kernel = functools.partial(_soft_split_kernel, k=k, th=th, w_out=w_out, c=c)

    return pl.pallas_call(
        kernel,
        out_shape=jax.ShapeDtypeStruct((n, l, c2), x.dtype),
        grid_spec=pltpu.PrefetchScalarGridSpec(
            num_scalar_prefetch=0,
            grid=(n, h_out // th),
            in_specs=[
                pl.BlockSpec((1, hp, wp, c), lambda b, t: (b, 0, 0, 0)),
                pl.BlockSpec((k * k, c, c2), lambda b, t: (0, 0, 0)),
                pl.BlockSpec((1, c2), lambda b, t: (0, 0)),
            ],
            out_specs=pl.BlockSpec((1, th * w_out, c2), lambda b, t: (b, t, 0)),
        ),
        compiler_params=pltpu.CompilerParams(
            dimension_semantics=("parallel", "parallel"),
        ),
    )(xp, w_perm, b2)


def _soft_split_ref(x, weight, bias, *, k=3, s=1):
    # Pure-JAX reference matching PyTorch Unfold + rearrange + Linear exactly.
    n, c, h, w = x.shape
    pad = (k - 1) // 2
    xp = jnp.pad(x, ((0, 0), (0, 0), (pad, pad), (pad, pad)))
    h_out = (h + 2 * pad - k) // s + 1
    w_out = (w + 2 * pad - k) // s + 1
    cols = []
    for i in range(k):
        for j in range(k):
            cols.append(xp[:, :, i:i + (h_out - 1) * s + 1:s,
                              j:j + (w_out - 1) * s + 1:s])
    u = jnp.stack(cols, axis=2)                      # (n, c, k*k, h_out, w_out)
    u = u.reshape(n, c * k * k, h_out * w_out)       # PyTorch unfold channel order
    u = jnp.transpose(u, (0, 2, 1))                  # 'n c p -> n p c'
    return u @ weight + bias


if __name__ == "__main__":
    key = jax.random.PRNGKey(0)
    k1, k2, k3 = jax.random.split(key, 3)

    N, C, H, W = 2, 4, 16, 16
    K, S, C2 = 3, 1, 32

    x = jax.random.normal(k1, (N, C, H, W), dtype=jnp.float32)
    weight = jax.random.normal(k2, (C * K * K, C2), dtype=jnp.float32) * 0.1
    bias = jax.random.normal(k3, (C2,), dtype=jnp.float32)

    out = soft_split(x, weight, bias, k=K, s=S, th=8)   # th=8 -> grid (2, 2)
    out = jax.block_until_ready(out)

    ref = _soft_split_ref(x, weight, bias, k=K, s=S)
    assert out.shape == (N, H * W, C2) and out.dtype == x.dtype
    assert jnp.allclose(out, ref, rtol=1e-4, atol=1e-4), "soft split mismatch"

    print("KERNEL_OK")
</pallas_src>

<mosaic_0001>
module attributes {stable_mosaic.version = 11 : i64} {
  func.func @_soft_split_kernel(%arg0: i32, %arg1: i32, %arg2: memref<1x18x18x4xf32, #tpu.memory_space<vmem>>, %arg3: memref<9x4x32xf32, #tpu.memory_space<vmem>>, %arg4: memref<1x32xf32, #tpu.memory_space<vmem>>, %arg5: memref<1x128x32xf32, #tpu.memory_space<vmem>>) attributes {dimension_semantics = [#tpu.dimension_semantics<parallel>, #tpu.dimension_semantics<parallel>], iteration_bounds = array<i64: 2, 2>, scalar_prefetch = 0 : i64, scratch_operands = 0 : i64, tpu.core_type = #tpu.core_type<tc>, window_params = [{transform_indices = @transform_0, window_bounds = array<i64: 1, 18, 18, 4>}, {pipeline_mode = #tpu.pipeline_mode<synchronous>, transform_indices = @transform_1, window_bounds = array<i64: 9, 4, 32>}, {pipeline_mode = #tpu.pipeline_mode<synchronous>, transform_indices = @transform_2, window_bounds = array<i64: 1, 32>}, {transform_indices = @transform_3, window_bounds = array<i64: 1, 128, 32>}]} {
    %c8_i32 = arith.constant 8 : i32
    %0 = arith.muli %arg1, %c8_i32 : i32
    %cst = arith.constant 0.000000e+00 : f32
    %1 = vector.broadcast %cst : f32 to vector<128x32xf32>
    %c0_i32 = arith.constant 0 : i32
    %2 = arith.addi %0, %c0_i32 : i32
    %c0 = arith.constant 0 : index
    %3 = arith.index_cast %2 : i32 to index
    %c0_0 = arith.constant 0 : index
    %c0_1 = arith.constant 0 : index
    %4 = vector.load %arg2[%c0, %3, %c0_0, %c0_1] : memref<1x18x18x4xf32, #tpu.memory_space<vmem>>, vector<1x8x16x4xf32>
    %5 = vector.shape_cast %4 : vector<1x8x16x4xf32> to vector<8x16x4xf32>
    %6 = vector.shape_cast %5 : vector<8x16x4xf32> to vector<128x4xf32>
    %c0_2 = arith.constant 0 : index
    %c0_3 = arith.constant 0 : index
    %c0_4 = arith.constant 0 : index
    %7 = vector.load %arg3[%c0_2, %c0_3, %c0_4] : memref<9x4x32xf32, #tpu.memory_space<vmem>>, vector<1x4x32xf32>
    %8 = vector.shape_cast %7 : vector<1x4x32xf32> to vector<4x32xf32>
    %cst_5 = arith.constant dense<0.000000e+00> : vector<128x32xf32>
    %9 = tpu.matmul %6, %8, %cst_5 {dimension_numbers = #tpu.dot_dimension_numbers<[1], [0], [0], [1], [0, 0, 1, 1], [], []>} : vector<128x4xf32>, vector<4x32xf32>, vector<128x32xf32> -> vector<128x32xf32>
    %10 = arith.addf %1, %9 : vector<128x32xf32>
    %c0_i32_6 = arith.constant 0 : i32
    %11 = arith.addi %0, %c0_i32_6 : i32
    %c0_7 = arith.constant 0 : index
    %12 = arith.index_cast %11 : i32 to index
    %c1 = arith.constant 1 : index
    %c0_8 = arith.constant 0 : index
    %13 = vector.load %arg2[%c0_7, %12, %c1, %c0_8] : memref<1x18x18x4xf32, #tpu.memory_space<vmem>>, vector<1x8x16x4xf32>
    %14 = vector.shape_cast %13 : vector<1x8x16x4xf32> to vector<8x16x4xf32>
    %15 = vector.shape_cast %14 : vector<8x16x4xf32> to vector<128x4xf32>
    %c1_9 = arith.constant 1 : index
    %c0_10 = arith.constant 0 : index
    %c0_11 = arith.constant 0 : index
    %16 = vector.load %arg3[%c1_9, %c0_10, %c0_11] : memref<9x4x32xf32, #tpu.memory_space<vmem>>, vector<1x4x32xf32>
    %17 = vector.shape_cast %16 : vector<1x4x32xf32> to vector<4x32xf32>
    %cst_12 = arith.constant dense<0.000000e+00> : vector<128x32xf32>
    %18 = tpu.matmul %15, %17, %cst_12 {dimension_numbers = #tpu.dot_dimension_numbers<[1], [0], [0], [1], [0, 0, 1, 1], [], []>} : vector<128x4xf32>, vector<4x32xf32>, vector<128x32xf32> -> vector<128x32xf32>
    %19 = arith.addf %10, %18 : vector<128x32xf32>
    %c0_i32_13 = arith.constant 0 : i32
    %20 = arith.addi %0, %c0_i32_13 : i32
    %c0_14 = arith.constant 0 : index
    %21 = arith.index_cast %20 : i32 to index
    %c2 = arith.constant 2 : index
    %c0_15 = arith.constant 0 : index
    %22 = vector.load %arg2[%c0_14, %21, %c2, %c0_15] : memref<1x18x18x4xf32, #tpu.memory_space<vmem>>, vector<1x8x16x4xf32>
    %23 = vector.shape_cast %22 : vector<1x8x16x4xf32> to vector<8x16x4xf32>
    %24 = vector.shape_cast %23 : vector<8x16x4xf32> to vector<128x4xf32>
    %c2_16 = arith.constant 2 : index
    %c0_17 = arith.constant 0 : index
    %c0_18 = arith.constant 0 : index
    %25 = vector.load %arg3[%c2_16, %c0_17, %c0_18] : memref<9x4x32xf32, #tpu.memory_space<vmem>>, vector<1x4x32xf32>
    %26 = vector.shape_cast %25 : vector<1x4x32xf32> to vector<4x32xf32>
    %cst_19 = arith.constant dense<0.000000e+00> : vector<128x32xf32>
    %27 = tpu.matmul %24, %26, %cst_19 {dimension_numbers = #tpu.dot_dimension_numbers<[1], [0], [0], [1], [0, 0, 1, 1], [], []>} : vector<128x4xf32>, vector<4x32xf32>, vector<128x32xf32> -> vector<128x32xf32>
    %28 = arith.addf %19, %27 : vector<128x32xf32>
    %c1_i32 = arith.constant 1 : i32
    %29 = arith.addi %0, %c1_i32 : i32
    %c0_20 = arith.constant 0 : index
    %30 = arith.index_cast %29 : i32 to index
    %c0_21 = arith.constant 0 : index
    %c0_22 = arith.constant 0 : index
    %31 = vector.load %arg2[%c0_20, %30, %c0_21, %c0_22] : memref<1x18x18x4xf32, #tpu.memory_space<vmem>>, vector<1x8x16x4xf32>
    %32 = vector.shape_cast %31 : vector<1x8x16x4xf32> to vector<8x16x4xf32>
    %33 = vector.shape_cast %32 : vector<8x16x4xf32> to vector<128x4xf32>
    %c3 = arith.constant 3 : index
    %c0_23 = arith.constant 0 : index
    %c0_24 = arith.constant 0 : index
    %34 = vector.load %arg3[%c3, %c0_23, %c0_24] : memref<9x4x32xf32, #tpu.memory_space<vmem>>, vector<1x4x32xf32>
    %35 = vector.shape_cast %34 : vector<1x4x32xf32> to vector<4x32xf32>
    %cst_25 = arith.constant dense<0.000000e+00> : vector<128x32xf32>
    %36 = tpu.matmul %33, %35, %cst_25 {dimension_numbers = #tpu.dot_dimension_numbers<[1], [0], [0], [1], [0, 0, 1, 1], [], []>} : vector<128x4xf32>, vector<4x32xf32>, vector<128x32xf32> -> vector<128x32xf32>
    %37 = arith.addf %28, %36 : vector<128x32xf32>
    %c1_i32_26 = arith.constant 1 : i32
    %38 = arith.addi %0, %c1_i32_26 : i32
    %c0_27 = arith.constant 0 : index
    %39 = arith.index_cast %38 : i32 to index
    %c1_28 = arith.constant 1 : index
    %c0_29 = arith.constant 0 : index
    %40 = vector.load %arg2[%c0_27, %39, %c1_28, %c0_29] : memref<1x18x18x4xf32, #tpu.memory_space<vmem>>, vector<1x8x16x4xf32>
    %41 = vector.shape_cast %40 : vector<1x8x16x4xf32> to vector<8x16x4xf32>
    %42 = vector.shape_cast %41 : vector<8x16x4xf32> to vector<128x4xf32>
    %c4 = arith.constant 4 : index
    %c0_30 = arith.constant 0 : index
    %c0_31 = arith.constant 0 : index
    %43 = vector.load %arg3[%c4, %c0_30, %c0_31] : memref<9x4x32xf32, #tpu.memory_space<vmem>>, vector<1x4x32xf32>
    %44 = vector.shape_cast %43 : vector<1x4x32xf32> to vector<4x32xf32>
    %cst_32 = arith.constant dense<0.000000e+00> : vector<128x32xf32>
    %45 = tpu.matmul %42, %44, %cst_32 {dimension_numbers = #tpu.dot_dimension_numbers<[1], [0], [0], [1], [0, 0, 1, 1], [], []>} : vector<128x4xf32>, vector<4x32xf32>, vector<128x32xf32> -> vector<128x32xf32>
    %46 = arith.addf %37, %45 : vector<128x32xf32>
    %c1_i32_33 = arith.constant 1 : i32
    %47 = arith.addi %0, %c1_i32_33 : i32
    %c0_34 = arith.constant 0 : index
    %48 = arith.index_cast %47 : i32 to index
    %c2_35 = arith.constant 2 : index
    %c0_36 = arith.constant 0 : index
    %49 = vector.load %arg2[%c0_34, %48, %c2_35, %c0_36] : memref<1x18x18x4xf32, #tpu.memory_space<vmem>>, vector<1x8x16x4xf32>
    %50 = vector.shape_cast %49 : vector<1x8x16x4xf32> to vector<8x16x4xf32>
    %51 = vector.shape_cast %50 : vector<8x16x4xf32> to vector<128x4xf32>
    %c5 = arith.constant 5 : index
    %c0_37 = arith.constant 0 : index
    %c0_38 = arith.constant 0 : index
    %52 = vector.load %arg3[%c5, %c0_37, %c0_38] : memref<9x4x32xf32, #tpu.memory_space<vmem>>, vector<1x4x32xf32>
    %53 = vector.shape_cast %52 : vector<1x4x32xf32> to vector<4x32xf32>
    %cst_39 = arith.constant dense<0.000000e+00> : vector<128x32xf32>
    %54 = tpu.matmul %51, %53, %cst_39 {dimension_numbers = #tpu.dot_dimension_numbers<[1], [0], [0], [1], [0, 0, 1, 1], [], []>} : vector<128x4xf32>, vector<4x32xf32>, vector<128x32xf32> -> vector<128x32xf32>
    %55 = arith.addf %46, %54 : vector<128x32xf32>
    %c2_i32 = arith.constant 2 : i32
    %56 = arith.addi %0, %c2_i32 : i32
    %c0_40 = arith.constant 0 : index
    %57 = arith.index_cast %56 : i32 to index
    %c0_41 = arith.constant 0 : index
    %c0_42 = arith.constant 0 : index
    %58 = vector.load %arg2[%c0_40, %57, %c0_41, %c0_42] : memref<1x18x18x4xf32, #tpu.memory_space<vmem>>, vector<1x8x16x4xf32>
    %59 = vector.shape_cast %58 : vector<1x8x16x4xf32> to vector<8x16x4xf32>
    %60 = vector.shape_cast %59 : vector<8x16x4xf32> to vector<128x4xf32>
    %c6 = arith.constant 6 : index
    %c0_43 = arith.constant 0 : index
    %c0_44 = arith.constant 0 : index
    %61 = vector.load %arg3[%c6, %c0_43, %c0_44] : memref<9x4x32xf32, #tpu.memory_space<vmem>>, vector<1x4x32xf32>
    %62 = vector.shape_cast %61 : vector<1x4x32xf32> to vector<4x32xf32>
    %cst_45 = arith.constant dense<0.000000e+00> : vector<128x32xf32>
    %63 = tpu.matmul %60, %62, %cst_45 {dimension_numbers = #tpu.dot_dimension_numbers<[1], [0], [0], [1], [0, 0, 1, 1], [], []>} : vector<128x4xf32>, vector<4x32xf32>, vector<128x32xf32> -> vector<128x32xf32>
    %64 = arith.addf %55, %63 : vector<128x32xf32>
    %c2_i32_46 = arith.constant 2 : i32
    %65 = arith.addi %0, %c2_i32_46 : i32
    %c0_47 = arith.constant 0 : index
    %66 = arith.index_cast %65 : i32 to index
    %c1_48 = arith.constant 1 : index
    %c0_49 = arith.constant 0 : index
    %67 = vector.load %arg2[%c0_47, %66, %c1_48, %c0_49] : memref<1x18x18x4xf32, #tpu.memory_space<vmem>>, vector<1x8x16x4xf32>
    %68 = vector.shape_cast %67 : vector<1x8x16x4xf32> to vector<8x16x4xf32>
    %69 = vector.shape_cast %68 : vector<8x16x4xf32> to vector<128x4xf32>
    %c7 = arith.constant 7 : index
    %c0_50 = arith.constant 0 : index
    %c0_51 = arith.constant 0 : index
    %70 = vector.load %arg3[%c7, %c0_50, %c0_51] : memref<9x4x32xf32, #tpu.memory_space<vmem>>, vector<1x4x32xf32>
    %71 = vector.shape_cast %70 : vector<1x4x32xf32> to vector<4x32xf32>
    %cst_52 = arith.constant dense<0.000000e+00> : vector<128x32xf32>
    %72 = tpu.matmul %69, %71, %cst_52 {dimension_numbers = #tpu.dot_dimension_numbers<[1], [0], [0], [1], [0, 0, 1, 1], [], []>} : vector<128x4xf32>, vector<4x32xf32>, vector<128x32xf32> -> vector<128x32xf32>
    %73 = arith.addf %64, %72 : vector<128x32xf32>
    %c2_i32_53 = arith.constant 2 : i32
    %74 = arith.addi %0, %c2_i32_53 : i32
    %c0_54 = arith.constant 0 : index
    %75 = arith.index_cast %74 : i32 to index
    %c2_55 = arith.constant 2 : index
    %c0_56 = arith.constant 0 : index
    %76 = vector.load %arg2[%c0_54, %75, %c2_55, %c0_56] : memref<1x18x18x4xf32, #tpu.memory_space<vmem>>, vector<1x8x16x4xf32>
    %77 = vector.shape_cast %76 : vector<1x8x16x4xf32> to vector<8x16x4xf32>
    %78 = vector.shape_cast %77 : vector<8x16x4xf32> to vector<128x4xf32>
    %c8 = arith.constant 8 : index
    %c0_57 = arith.constant 0 : index
    %c0_58 = arith.constant 0 : index
    %79 = vector.load %arg3[%c8, %c0_57, %c0_58] : memref<9x4x32xf32, #tpu.memory_space<vmem>>, vector<1x4x32xf32>
    %80 = vector.shape_cast %79 : vector<1x4x32xf32> to vector<4x32xf32>
    %cst_59 = arith.constant dense<0.000000e+00> : vector<128x32xf32>
    %81 = tpu.matmul %78, %80, %cst_59 {dimension_numbers = #tpu.dot_dimension_numbers<[1], [0], [0], [1], [0, 0, 1, 1], [], []>} : vector<128x4xf32>, vector<4x32xf32>, vector<128x32xf32> -> vector<128x32xf32>
    %82 = arith.addf %73, %81 : vector<128x32xf32>
    %c0_60 = arith.constant 0 : index
    %c0_61 = arith.constant 0 : index
    %83 = vector.load %arg4[%c0_60, %c0_61] : memref<1x32xf32, #tpu.memory_space<vmem>>, vector<1x32xf32>
    %84 = vector.broadcast %83 : vector<1x32xf32> to vector<128x32xf32>
    %85 = arith.addf %82, %84 : vector<128x32xf32>
    %c0_62 = arith.constant 0 : index
    %c0_63 = arith.constant 0 : index
    %c0_64 = arith.constant 0 : index
    %86 = vector.load %arg5[%c0_62, %c0_63, %c0_64] : memref<1x128x32xf32, #tpu.memory_space<vmem>>, vector<1x128x32xf32>
    %87 = vector.shape_cast %86 : vector<1x128x32xf32> to vector<128x32xf32>
    %88 = vector.shape_cast %85 : vector<128x32xf32> to vector<1x128x32xf32>
    tpu.vector_store %arg5[%c0_62, %c0_63, %c0_64], %88 {strides = array<i32>} : memref<1x128x32xf32, #tpu.memory_space<vmem>>, vector<1x128x32xf32>,
    return
  }
  func.func @transform_0(%arg0: i32, %arg1: i32) -> (i32, i32, i32, i32) {
    %c0_i32 = arith.constant 0 : i32
    %c0_i32_0 = arith.constant 0 : i32
    %c0_i32_1 = arith.constant 0 : i32
    %c0_i32_2 = arith.constant 0 : i32
    return %arg0, %c0_i32, %c0_i32_0, %c0_i32_1 : i32, i32, i32, i32
  }
  func.func @transform_1(%arg0: i32, %arg1: i32) -> (i32, i32, i32) {
    %c0_i32 = arith.constant 0 : i32
    %c0_i32_0 = arith.constant 0 : i32
    %c0_i32_1 = arith.constant 0 : i32
    %c0_i32_2 = arith.constant 0 : i32
    return %c0_i32, %c0_i32_0, %c0_i32_1 : i32, i32, i32
  }
  func.func @transform_2(%arg0: i32, %arg1: i32) -> (i32, i32) {
    %c0_i32 = arith.constant 0 : i32
    %c0_i32_0 = arith.constant 0 : i32
    %c0_i32_1 = arith.constant 0 : i32
    return %c0_i32, %c0_i32_0 : i32, i32
  }
  func.func @transform_3(%arg0: i32, %arg1: i32) -> (i32, i32, i32) {
    %c0_i32 = arith.constant 0 : i32
    %c0_i32_0 = arith.constant 0 : i32
    return %arg0, %arg1, %c0_i32 : i32, i32, i32
  }
}

</mosaic_0001>

<bundles_post_ra>
// kernel: tpu_custom_call.1
= control target key start
LH: loop header
LB: loop body
LE: loop exit
PB: predicated region body
PF: predicated region fallthrough
CT: control target
= control target key end

     0   :  { %s3141_s12 = smov 0   ;;  %s3143_s13 = smov 0   ;;  %s3925_s0 = inlined_call_operand.vmem [shape: f32[2,18,18,4], index: 0, kind: input, shape index: {}]   ;;  %s3926_s1 = inlined_call_operand.vmem [shape: f32[9,4,32], index: 1, kind: input, shape index: {}]   ;;  %s3927_s2 = inlined_call_operand.vmem [shape: f32[1,32], index: 2, kind: input, shape index: {}]   ;;  %s3928_s3 = inlined_call_operand.vmem [shape: f32[2,256,32], index: 3, kind: output, shape index: {}]  }
   0x1   :  { %s3145_s14 = smov 0   ;;  %s3147_s15 = smov 0  }
   0x2   :  { %s3149_s16 = smov 0  }
   0x3 LB: > { %s22_s17 = sadd.s32 1, %s3111_s14  ;;  %s25_s18 = sadd.s32 1, %s3115_s15  ;;  %s3119_s16 = sphi %s3149_s16, %s13_s16   ;;  %s3115_s15 = sphi %s3147_s15, %s3968_s15   ;;  %s3111_s14 = sphi %s3145_s14, %s3967_s14   ;;  %s3107_s13 = sphi %s3143_s13, %s3966_s13   ;;  %s3103_s12 = sphi %s3141_s12, %s3965_s12  }
   0x4   : > { %p23_p0 = scmp.ge.s32.totalorder %s22_s17, 2  ;;  %p2380_p1 = scmp.ge.s32.totalorder %s3119_s16, 1 }
   0x5   : > { %p151_p2 = scmp.lt.s32.totalorder %s3119_s16, 5 }
   0x6   : > { %s3970_s17 = smov (%p23_p0, %s22_s17), 0  ;;  %s3972_s18 = smov (!%p23_p0, %s25_s18), %s3115_s15 }
   0x7   : > { %p152_p3 = pnand %p2380_p1, %p151_p2  ;;  %p27_p4 = scmp.ge.s32.totalorder %s3972_s18, 2 }
   0x9   : > { %s3974_s18 = smov (%p27_p4, %s3972_s18), 0  ;;  %155 = sbr.rel (%p152_p3) target bundleno = 366 (0x16e), region = 32 }
   0xe   : > { %v2387_v0 = vld [vmem:[%s3926_s1 + $0x4] sm:$0xf]  ;;  %vm281_vm0 = vcmask 1043456   ;;  %p179_p5 = scmp.lt.s32.totalorder %s3107_s13, 1  ;;  %v213_v1 = vld [vmem:[%s3926_s1] sm:$0xf] }
   0xf   : > { %3038 = vmatprep.subr.msk.mxu1 %vm281_vm0, %v2387_v0  ;;  %2804 = vmatprep.subr.msk.mxu0 %vm281_vm0, %v2387_v0  ;;  %v2422_v2 = vld [vmem:[%s3926_s1 + $0x8] sm:$0xf]  ;;  %s2386_s25 = smul.u32 192, %s3103_s12  ;;  %vm232_vm1 = vcmask 31744   ;;  %v2458_v9 = vld [vmem:[%s3926_s1 + $0xc] sm:$0xf] }
  0x10   : > { %3039 = vmatpush3.msk.msra.mxu1 %vm281_vm0, %v2387_v0  ;;  %2805 = vmatpush3.msk.msra.mxu0 %vm281_vm0, %v2387_v0  ;;  %s3976_s13 = smov (!%p179_p5, %s3107_s13), 1  ;;  %v2492_v10 = vld [vmem:[%s3926_s1 + $0x10] sm:$0xf]  ;;  %v3298_v27 = vld [vmem:[%s3926_s1 + $0x14] sm:$0xf]  ;;  %s2382_s23 = sshll.u32 %s3103_s12, 4 }
  0x11   : > { %2830 = vmatprep.subr.msk.mxu1 %vm281_vm0, %v213_v1  ;;  %2856 = vmatprep.subr.msk.mxu0 %vm281_vm0, %v2422_v2  ;;  %s3040_s26 = smul.u32 432, %s3976_s13  ;;  %v3303_v28 = vld [vmem:[%s3926_s1 + $0x18] sm:$0xf]  ;;  %v2596_v55 = vld [vmem:[%s3926_s1 + $0x1c] sm:$0xf]  ;;  %p187_p6 = scmp.lt.s32.totalorder %s2382_s23, 31 }
  0x12   : > { %v2630_v56 = vld [vmem:[%s3926_s1 + $0x20] sm:$0xf]  ;;  %s2383_s12 = sshll.u32 %s3976_s13, 5  ;;  %vm2265_vm2 = vcmask 261120  }
  0x13   : > { %s183_s29 = scalar_lea.vmem %s3925_s0, %s3040_s26  ;;  %s3978_s23 = smov (!%p187_p6, %s2382_s23), 31 }
  0x14   : > { %s3195_s30 = scalar_lea.vmem %s183_s29, %s2386_s25  ;;  %s190_s24 = sadd.s32 %s2383_s12, %s3978_s23 }
  0x15   : > { %v214_v3 = vld [vmem:[%s3195_s30 + $0x1] sm:$0xff]  ;;  %v215_v5 = vld [vmem:[%s3195_s30 + $0x9] sm:$0xff]  ;;  %v3209_v7 = vld [vmem:[%s3195_s30 + $0x19] sm:$0xff]  ;;  %s2384_s13 = sshll.u32 %s190_s24, 3 }
  0x16   : > { %v3199_v4 = vld [vmem:[%s3195_s30 + $0x61] sm:$0xff]  ;;  %2806 = vmatprep.mubr.msk.f32.mxu0 %vm232_vm1, %v214_v3  ;;  %v3206_v6 = vld [vmem:[%s3195_s30 + $0x69] sm:$0xff]  ;;  %v3212_v8 = vld [vmem:[%s3195_s30 + $0x79] sm:$0xff]  ;;  %s3814_s29 = scalar_lea.vmem %s3928_s3, %s2384_s13 }
  0x17   : > { %2818 = vmatprep.mubr.msk.f32.mxu1 %vm232_vm1, %v3199_v4  ;;  %2807 = vmatmul.mubr.msk.f32.vlgmr.msra.gmra.mxu0 %vm232_vm1, %v215_v5  ;;  %v3226_v11 = vld [vmem:[%s3195_s30 + $0x21] sm:$0xff]  ;;  %v3236_v13 = vld [vmem:[%s3195_s30 + $0x31] sm:$0xff]  ;;  %v3252_v15 = vld [vmem:[%s3195_s30 + $0x39] sm:$0xff] }
  0x18   : > { %2819 = vmatmul.mubr.msk.f32.vlgmr.msra.gmra.mxu1 %vm232_vm1, %v3206_v6  ;;  %2857 = vmatpush3.msk.msra.mxu0 %vm281_vm0, %v2422_v2  ;;  %v3229_v12 = vld [vmem:[%s3195_s30 + $0x81] sm:$0xff]  ;;  %v3239_v14 = vld [vmem:[%s3195_s30 + $0x91] sm:$0xff]  ;;  %v3255_v16 = vld [vmem:[%s3195_s30 + $0x99] sm:$0xff] }
  0x19   : > { %2831 = vmatpush3.msk.msra.mxu1 %vm281_vm0, %v213_v1  ;;  %2809 = vmatprep.mubr.msk.f32.mxu0 %vm232_vm1, %v3209_v7  ;;  %v3258_v17 = vld [vmem:[%s3195_s30 + $0x49] sm:$0xff]  ;;  %v3272_v19 = vld [vmem:[%s3195_s30 + $0x51] sm:$0xff]  ;;  %v197_v21 = vld [vmem:[%s3195_s30] sm:$0xff] }
  0x1a   : > { %2821 = vmatprep.mubr.msk.f32.mxu1 %vm232_vm1, %v3212_v8  ;;  %2882 = vmatprep.subr.msk.mxu1 %vm281_vm0, %v2458_v9  ;;  %v3261_v18 = vld [vmem:[%s3195_s30 + $0xa9] sm:$0xff]  ;;  %v3275_v20 = vld [vmem:[%s3195_s30 + $0xb1] sm:$0xff]  ;;  %v3291_v26 = vld [vmem:[%s3195_s30 + $0x1a] sm:$0xff] }
  0x1b   : > { %2908 = vmatprep.subr.msk.mxu0 %vm281_vm0, %v2492_v10  ;;  %2810 = vmatmul.mubr.msk.f32.gmra.mxu0 %vm232_vm1, %v3226_v11  ;;  %v626_v22 = vld [vmem:[%s3195_s30 + $0x2] sm:$0xff]  ;;  %v627_v24 = vld [vmem:[%s3195_s30 + $0xa] sm:$0xff]  ;;  %v3288_v25 = vld [vmem:[%s3195_s30 + $0x18] sm:$0xff] }
  0x1c   : > { %2822 = vmatmul.mubr.msk.f32.gmra.mxu1 %vm232_vm1, %v3229_v12  ;;  %2812 = vmatprep.mubr.msk.f32.mxu0 %vm232_vm1, %v3236_v13  ;;  %v198_v23 = vld [vmem:[%s3195_s30 + $0x8] sm:$0xff]  ;;  %v200_v29 = vld [vmem:[%s3195_s30 + $0x20] sm:$0xff]  ;;  %v3316_v31 = vld [vmem:[%s3195_s30 + $0x30] sm:$0xff] }
  0x1d   : > { %2824 = vmatprep.mubr.msk.f32.mxu1 %vm232_vm1, %v3239_v14  ;;  %v3309_v30 = vld [vmem:[%s3195_s30 + $0x22] sm:$0xff]  ;;  %v3319_v32 = vld [vmem:[%s3195_s30 + $0x32] sm:$0xff]  ;;  %v3336_v34 = vld [vmem:[%s3195_s30 + $0x3a] sm:$0xff] }
  0x1e   : > { %v3333_v33 = vld [vmem:[%s3195_s30 + $0x38] sm:$0xff]  ;;  %v3339_v35 = vld [vmem:[%s3195_s30 + $0x48] sm:$0xff]  ;;  %v3353_v37 = vld [vmem:[%s3195_s30 + $0x50] sm:$0xff] }
  0x1f   : > { %2813 = vmatmul.mubr.msk.f32.gmra.mxu0 %vm232_vm1, %v3252_v15  ;;  %v3342_v36 = vld [vmem:[%s3195_s30 + $0x4a] sm:$0xff]  ;;  %v3356_v38 = vld [vmem:[%s3195_s30 + $0x52] sm:$0xff]  ;;  %v3359_v39 = vld [vmem:[%s3195_s30 + $0x60] sm:$0xff] }
  0x20   : > { %2825 = vmatmul.mubr.msk.f32.gmra.mxu1 %vm232_vm1, %v3255_v16  ;;  %2815 = vmatprep.mubr.msk.f32.mxu0 %vm232_vm1, %v3258_v17  ;;  %v3362_v40 = vld [vmem:[%s3195_s30 + $0x62] sm:$0xff]  ;;  %v3376_v42 = vld [vmem:[%s3195_s30 + $0x6a] sm:$0xff]  ;;  %v3379_v43 = vld [vmem:[%s3195_s30 + $0x78] sm:$0xff] }
  0x21   : > { %2827 = vmatprep.mubr.msk.f32.mxu1 %vm232_vm1, %v3261_v18  ;;  %v3373_v41 = vld [vmem:[%s3195_s30 + $0x68] sm:$0xff]  ;;  %v3382_v44 = vld [vmem:[%s3195_s30 + $0x7a] sm:$0xff]  ;;  %v3399_v47 = vld [vmem:[%s3195_s30 + $0x90] sm:$0xff] }
  0x22   : > { %v3393_v45 = vld [vmem:[%s3195_s30 + $0x80] sm:$0xff]  ;;  %v3402_v48 = vld [vmem:[%s3195_s30 + $0x92] sm:$0xff]  ;;  %v3419_v51 = vld [vmem:[%s3195_s30 + $0xa8] sm:$0xff] }
  0x23   : > { %2816 = vmatmul.mubr.msk.f32.gmra.mxu0 %vm232_vm1, %v3272_v19  ;;  %v3396_v46 = vld [vmem:[%s3195_s30 + $0x82] sm:$0xff]  ;;  %v3413_v49 = vld [vmem:[%s3195_s30 + $0x98] sm:$0xff]  ;;  %v3422_v52 = vld [vmem:[%s3195_s30 + $0xaa] sm:$0xff] }
  0x24   : > { %2828 = vmatmul.mubr.msk.f32.gmra.mxu1 %vm232_vm1, %v3275_v20  ;;  %2858 = vmatprep.mubr.msk.f32.mxu0 %vm232_vm1, %v626_v22  ;;  %v3416_v50 = vld [vmem:[%s3195_s30 + $0x9a] sm:$0xff]  ;;  %v3433_v53 = vld [vmem:[%s3195_s30 + $0xb0] sm:$0xff]  ;;  %v2457_v59 = vld [vmem:[%s3195_s30 + $0xc8] sm:$0xff] }
  0x25   : > { %2832 = vmatprep.mubr.msk.f32.mxu1 %vm232_vm1, %v197_v21  ;;  %v3436_v54 = vld [vmem:[%s3195_s30 + $0xb2] sm:$0xff]  ;;  %v2456_v57 = vld [vmem:[%s3195_s30 + $0xc0] sm:$0xff]  ;;  %v3518_v60 = vld [vmem:[%s3195_s30 + $0xc9] sm:$0xff] }
  0x26   : > { %v3507_v58 = vld [vmem:[%s3195_s30 + $0xc1] sm:$0xff]  ;;  %v2560_v62 = vld [vmem:[%s3195_s30 + $0xd8] sm:$0xff]  ;;  %v2525_v63 = vld [vmem:[%s3195_s30 + $0xca] sm:$0xff] }
  0x27   : > { %2859 = vmatmul.mubr.msk.f32.vlgmr.msra.gmra.mxu0 %vm232_vm1, %v627_v24  ;;  %v2524_v61 = vld [vmem:[%s3195_s30 + $0xc2] sm:$0xff]  ;;  %v2594_v1 = vld [vmem:[%s3195_s30 + $0xd9] sm:$0xff] }
  0x28   : > { %2833 = vmatmul.mubr.msk.f32.vlgmr.msra.gmra.mxu1 %vm232_vm1, %v198_v23  ;;  %2909 = vmatpush3.msk.msra.mxu0 %vm281_vm0, %v2492_v10  ;;  %v2561_v0 = vld [vmem:[%s3195_s30 + $0xe0] sm:$0xff] }
  0x29   : > { %2883 = vmatpush3.msk.msra.mxu1 %vm281_vm0, %v2458_v9  ;;  %2835 = vmatprep.mubr.msk.f32.mxu1 %vm232_vm1, %v3288_v25  ;;  %v2628_v2 = vld [vmem:[%s3195_s30 + $0xda] sm:$0xff] }
  0x2a   : > { %2861 = vmatprep.mubr.msk.f32.mxu0 %vm232_vm1, %v3291_v26  ;;  %2934 = vmatprep.subr.msk.mxu1 %vm281_vm0, %v3298_v27  ;;  %v2595_v3 = vld [vmem:[%s3195_s30 + $0xe1] sm:$0xff] }
  0x2b   : > { %2960 = vmatprep.subr.msk.mxu0 %vm281_vm0, %v3303_v28  ;;  %2862 = vmatmul.mubr.msk.f32.gmra.mxu0 %vm232_vm1, %v3309_v30 }
  0x2c   : > { %2836 = vmatmul.mubr.msk.f32.gmra.mxu1 %vm232_vm1, %v200_v29  ;;  %2864 = vmatprep.mubr.msk.f32.mxu0 %vm232_vm1, %v3319_v32 }
  0x2d   : > { %2838 = vmatprep.mubr.msk.f32.mxu1 %vm232_vm1, %v3316_v31 }
  0x2f   : > { %2865 = vmatmul.mubr.msk.f32.gmra.mxu0 %vm232_vm1, %v3336_v34 }
  0x30   : > { %2839 = vmatmul.mubr.msk.f32.gmra.mxu1 %vm232_vm1, %v3333_v33  ;;  %2867 = vmatprep.mubr.msk.f32.mxu0 %vm232_vm1, %v3342_v36 }
  0x31   : > { %2841 = vmatprep.mubr.msk.f32.mxu1 %vm232_vm1, %v3339_v35 }
  0x33   : > { %2868 = vmatmul.mubr.msk.f32.gmra.mxu0 %vm232_vm1, %v3356_v38 }
  0x34   : > { %2842 = vmatmul.mubr.msk.f32.gmra.mxu1 %vm232_vm1, %v3353_v37  ;;  %2870 = vmatprep.mubr.msk.f32.mxu0 %vm232_vm1, %v3362_v40 }
  0x35   : > { %2844 = vmatprep.mubr.msk.f32.mxu1 %vm232_vm1, %v3359_v39 }
  0x37   : > { %2871 = vmatmul.mubr.msk.f32.gmra.mxu0 %vm232_vm1, %v3376_v42 }
  0x38   : > { %2845 = vmatmul.mubr.msk.f32.gmra.mxu1 %vm232_vm1, %v3373_v41  ;;  %2873 = vmatprep.mubr.msk.f32.mxu0 %vm232_vm1, %v3382_v44 }
  0x39   : > { %2847 = vmatprep.mubr.msk.f32.mxu1 %vm232_vm1, %v3379_v43 }
  0x3b   : > { %2874 = vmatmul.mubr.msk.f32.gmra.mxu0 %vm232_vm1, %v3396_v46 }
  0x3c   : > { %2848 = vmatmul.mubr.msk.f32.gmra.mxu1 %vm232_vm1, %v3393_v45  ;;  %2876 = vmatprep.mubr.msk.f32.mxu0 %vm232_vm1, %v3402_v48 }
  0x3d   : > { %2850 = vmatprep.mubr.msk.f32.mxu1 %vm232_vm1, %v3399_v47 }
  0x3f   : > { %2877 = vmatmul.mubr.msk.f32.gmra.mxu0 %vm232_vm1, %v3416_v50 }
  0x40   : > { %2851 = vmatmul.mubr.msk.f32.gmra.mxu1 %vm232_vm1, %v3413_v49  ;;  %2879 = vmatprep.mubr.msk.f32.mxu0 %vm232_vm1, %v3422_v52 }
  0x41   : > { %2853 = vmatprep.mubr.msk.f32.mxu1 %vm232_vm1, %v3419_v51 }
  0x43   : > { %2880 = vmatmul.mubr.msk.f32.gmra.mxu0 %vm232_vm1, %v3436_v54 }
  0x44   : > { %2854 = vmatmul.mubr.msk.f32.gmra.mxu1 %vm232_vm1, %v3433_v53  ;;  %2910 = vmatprep.mubr.msk.f32.mxu0 %vm232_vm1, %v3209_v7 }
  0x45   : > { %2884 = vmatprep.mubr.msk.f32.mxu1 %vm232_vm1, %v3288_v25 }
  0x47   : > { %2911 = vmatmul.mubr.msk.f32.vlgmr.msra.gmra.mxu0 %vm232_vm1, %v3226_v11 }
  0x48   : > { %2885 = vmatmul.mubr.msk.f32.vlgmr.msra.gmra.mxu1 %vm232_vm1, %v200_v29  ;;  %2961 = vmatpush3.msk.msra.mxu0 %vm281_vm0, %v3303_v28 }
  0x49   : > { %2935 = vmatpush3.msk.msra.mxu1 %vm281_vm0, %v3298_v27  ;;  %2887 = vmatprep.mubr.msk.f32.mxu1 %vm232_vm1, %v3316_v31 }
  0x4a   : > { %2913 = vmatprep.mubr.msk.f32.mxu0 %vm232_vm1, %v3236_v13  ;;  %2986 = vmatprep.subr.msk.mxu1 %vm281_vm0, %v2596_v55 }
  0x4b   : > { %3012 = vmatprep.subr.msk.mxu0 %vm281_vm0, %v2630_v56  ;;  %2914 = vmatmul.mubr.msk.f32.gmra.mxu0 %vm232_vm1, %v3252_v15 }
  0x4c   : > { %2888 = vmatmul.mubr.msk.f32.gmra.mxu1 %vm232_vm1, %v3333_v33  ;;  %2916 = vmatprep.mubr.msk.f32.mxu0 %vm232_vm1, %v3258_v17 }
  0x4d   : > { %2890 = vmatprep.mubr.msk.f32.mxu1 %vm232_vm1, %v3339_v35 }
  0x4f   : > { %2917 = vmatmul.mubr.msk.f32.gmra.mxu0 %vm232_vm1, %v3272_v19 }
  0x50   : > { %2891 = vmatmul.mubr.msk.f32.gmra.mxu1 %vm232_vm1, %v3353_v37  ;;  %2919 = vmatprep.mubr.msk.f32.mxu0 %vm232_vm1, %v3199_v4 }
  0x51   : > { %2893 = vmatprep.mubr.msk.f32.mxu1 %vm232_vm1, %v3359_v39 }
  0x53   : > { %2920 = vmatmul.mubr.msk.f32.gmra.mxu0 %vm232_vm1, %v3206_v6 }
  0x54   : > { %2894 = vmatmul.mubr.msk.f32.gmra.mxu1 %vm232_vm1, %v3373_v41  ;;  %2922 = vmatprep.mubr.msk.f32.mxu0 %vm232_vm1, %v3212_v8 }
  0x55   : > { %2896 = vmatprep.mubr.msk.f32.mxu1 %vm232_vm1, %v3379_v43 }
  0x57   : > { %2923 = vmatmul.mubr.msk.f32.gmra.mxu0 %vm232_vm1, %v3229_v12 }
  0x58   : > { %2897 = vmatmul.mubr.msk.f32.gmra.mxu1 %vm232_vm1, %v3393_v45  ;;  %2925 = vmatprep.mubr.msk.f32.mxu0 %vm232_vm1, %v3239_v14 }
  0x59   : > { %2899 = vmatprep.mubr.msk.f32.mxu1 %vm232_vm1, %v3399_v47 }
  0x5b   : > { %2926 = vmatmul.mubr.msk.f32.gmra.mxu0 %vm232_vm1, %v3255_v16 }
  0x5c   : > { %2900 = vmatmul.mubr.msk.f32.gmra.mxu1 %vm232_vm1, %v3413_v49  ;;  %2928 = vmatprep.mubr.msk.f32.mxu0 %vm232_vm1, %v3261_v18 }
  0x5d   : > { %2902 = vmatprep.mubr.msk.f32.mxu1 %vm232_vm1, %v3419_v51 }
  0x5f   : > { %2929 = vmatmul.mubr.msk.f32.gmra.mxu0 %vm232_vm1, %v3275_v20 }
  0x60   : > { %2903 = vmatmul.mubr.msk.f32.gmra.mxu1 %vm232_vm1, %v3433_v53  ;;  %2931 = vmatprep.mubr.msk.f32.mxu0 %vm232_vm1, %v3507_v58 }
  0x61   : > { %2905 = vmatprep.mubr.msk.f32.mxu1 %vm232_vm1, %v2456_v57 }
  0x63   : > { %2932 = vmatmul.mubr.msk.f32.gmra.mxu0 %vm232_vm1, %v3518_v60 }
  0x64   : > { %2906 = vmatmul.mubr.msk.f32.gmra.mxu1 %vm232_vm1, %v2457_v59  ;;  %2962 = vmatprep.mubr.msk.f32.mxu0 %vm232_vm1, %v3316_v31 }
  0x65   : > { %2936 = vmatprep.mubr.msk.f32.mxu1 %vm232_vm1, %v3291_v26 }
  0x67   : > { %2963 = vmatmul.mubr.msk.f32.vlgmr.msra.gmra.mxu0 %vm232_vm1, %v3333_v33 }
  0x68   : > { %2937 = vmatmul.mubr.msk.f32.vlgmr.msra.gmra.mxu1 %vm232_vm1, %v3309_v30  ;;  %3013 = vmatpush3.msk.msra.mxu0 %vm281_vm0, %v2630_v56 }
  0x69   : > { %2987 = vmatpush3.msk.msra.mxu1 %vm281_vm0, %v2596_v55  ;;  %2939 = vmatprep.mubr.msk.f32.mxu1 %vm232_vm1, %v3319_v32 }
  0x6a   : > { %2965 = vmatprep.mubr.msk.f32.mxu0 %vm232_vm1, %v3339_v35 }
  0x6b   : > { %2966 = vmatmul.mubr.msk.f32.gmra.mxu0 %vm232_vm1, %v3353_v37 }
  0x6c   : > { %2940 = vmatmul.mubr.msk.f32.gmra.mxu1 %vm232_vm1, %v3336_v34  ;;  %2968 = vmatprep.mubr.msk.f32.mxu0 %vm232_vm1, %v3359_v39 }
  0x6d   : > { %2942 = vmatprep.mubr.msk.f32.mxu1 %vm232_vm1, %v3342_v36 }
  0x6f   : > { %2969 = vmatmul.mubr.msk.f32.gmra.mxu0 %vm232_vm1, %v3373_v41 }
  0x70   : > { %2943 = vmatmul.mubr.msk.f32.gmra.mxu1 %vm232_vm1, %v3356_v38  ;;  %2971 = vmatprep.mubr.msk.f32.mxu0 %vm232_vm1, %v3379_v43 }
  0x71   : > { %2945 = vmatprep.mubr.msk.f32.mxu1 %vm232_vm1, %v3362_v40 }
  0x73   : > { %2972 = vmatmul.mubr.msk.f32.gmra.mxu0 %vm232_vm1, %v3393_v45 }
  0x74   : > { %2946 = vmatmul.mubr.msk.f32.gmra.mxu1 %vm232_vm1, %v3376_v42  ;;  %2974 = vmatprep.mubr.msk.f32.mxu0 %vm232_vm1, %v3399_v47 }
  0x75   : > { %2948 = vmatprep.mubr.msk.f32.mxu1 %vm232_vm1, %v3382_v44 }
  0x77   : > { %2975 = vmatmul.mubr.msk.f32.gmra.mxu0 %vm232_vm1, %v3413_v49 }
  0x78   : > { %2949 = vmatmul.mubr.msk.f32.gmra.mxu1 %vm232_vm1, %v3396_v46  ;;  %2977 = vmatprep.mubr.msk.f32.mxu0 %vm232_vm1, %v3419_v51 }
  0x79   : > { %2951 = vmatprep.mubr.msk.f32.mxu1 %vm232_vm1, %v3402_v48 }
  0x7b   : > { %2978 = vmatmul.mubr.msk.f32.gmra.mxu0 %vm232_vm1, %v3433_v53 }
  0x7c   : > { %2952 = vmatmul.mubr.msk.f32.gmra.mxu1 %vm232_vm1, %v3416_v50  ;;  %2980 = vmatprep.mubr.msk.f32.mxu0 %vm232_vm1, %v2456_v57 }
  0x7d   : > { %2954 = vmatprep.mubr.msk.f32.mxu1 %vm232_vm1, %v3422_v52 }
  0x7f   : > { %2981 = vmatmul.mubr.msk.f32.gmra.mxu0 %vm232_vm1, %v2457_v59 }
  0x80   : > { %2955 = vmatmul.mubr.msk.f32.gmra.mxu1 %vm232_vm1, %v3436_v54  ;;  %2983 = vmatprep.mubr.msk.f32.mxu0 %vm232_vm1, %v2560_v62 }
  0x81   : > { %2957 = vmatprep.mubr.msk.f32.mxu1 %vm232_vm1, %v2524_v61 }
  0x83   : > { %2984 = vmatmul.mubr.msk.f32.gmra.mxu0 %vm232_vm1, %v2561_v0 }
  0x84   : > { %2958 = vmatmul.mubr.msk.f32.gmra.mxu1 %vm232_vm1, %v2525_v63  ;;  %3014 = vmatprep.mubr.msk.f32.mxu0 %vm232_vm1, %v3319_v32 }
  0x85   : > { %2988 = vmatprep.mubr.msk.f32.mxu1 %vm232_vm1, %v3236_v13 }
  0x87   : > { %3015 = vmatmul.mubr.msk.f32.vlgmr.msra.gmra.mxu0 %vm232_vm1, %v3336_v34 }
  0x88   : > { %2989 = vmatmul.mubr.msk.f32.vlgmr.msra.gmra.mxu1 %vm232_vm1, %v3252_v15  ;;  %3017 = vmatprep.mubr.msk.f32.mxu0 %vm232_vm1, %v3342_v36 }
  0x89   : > { %2991 = vmatprep.mubr.msk.f32.mxu1 %vm232_vm1, %v3258_v17 }
  0x8b   : > { %3018 = vmatmul.mubr.msk.f32.gmra.mxu0 %vm232_vm1, %v3356_v38 }
  0x8c   : > { %2992 = vmatmul.mubr.msk.f32.gmra.mxu1 %vm232_vm1, %v3272_v19  ;;  %3020 = vmatprep.mubr.msk.f32.mxu0 %vm232_vm1, %v3362_v40 }
  0x8d   : > { %2994 = vmatprep.mubr.msk.f32.mxu1 %vm232_vm1, %v3199_v4  ;;  %v2629_v4 = vld [vmem:[%s3195_s30 + $0xe2] sm:$0xff] }
  0x8f   : > { %3021 = vmatmul.mubr.msk.f32.gmra.mxu0 %vm232_vm1, %v3376_v42 }
  0x90   : > { %2995 = vmatmul.mubr.msk.f32.gmra.mxu1 %vm232_vm1, %v3206_v6  ;;  %3023 = vmatprep.mubr.msk.f32.mxu0 %vm232_vm1, %v3382_v44 }
  0x91   : > { %2997 = vmatprep.mubr.msk.f32.mxu1 %vm232_vm1, %v3212_v8 }
  0x93   : > { %3024 = vmatmul.mubr.msk.f32.gmra.mxu0 %vm232_vm1, %v3396_v46 }
  0x94   : > { %2998 = vmatmul.mubr.msk.f32.gmra.mxu1 %vm232_vm1, %v3229_v12  ;;  %3026 = vmatprep.mubr.msk.f32.mxu0 %vm232_vm1, %v3402_v48 }
  0x95   : > { %3000 = vmatprep.mubr.msk.f32.mxu1 %vm232_vm1, %v3239_v14 }
  0x97   : > { %3027 = vmatmul.mubr.msk.f32.gmra.mxu0 %vm232_vm1, %v3416_v50 }
  0x98   : > { %3001 = vmatmul.mubr.msk.f32.gmra.mxu1 %vm232_vm1, %v3255_v16  ;;  %3029 = vmatprep.mubr.msk.f32.mxu0 %vm232_vm1, %v3422_v52 }
  0x99   : > { %3003 = vmatprep.mubr.msk.f32.mxu1 %vm232_vm1, %v3261_v18 }
  0x9b   : > { %3030 = vmatmul.mubr.msk.f32.gmra.mxu0 %vm232_vm1, %v3436_v54 }
  0x9c   : > { %3004 = vmatmul.mubr.msk.f32.gmra.mxu1 %vm232_vm1, %v3275_v20  ;;  %3032 = vmatprep.mubr.msk.f32.mxu0 %vm232_vm1, %v2524_v61 }
  0x9d   : > { %3006 = vmatprep.mubr.msk.f32.mxu1 %vm232_vm1, %v3507_v58 }
  0x9f   : > { %3033 = vmatmul.mubr.msk.f32.gmra.mxu0 %vm232_vm1, %v2525_v63 }
  0xa0   : > { %3007 = vmatmul.mubr.msk.f32.gmra.mxu1 %vm232_vm1, %v3518_v60  ;;  %3035 = vmatprep.mubr.msk.f32.mxu0 %vm232_vm1, %v2628_v2 }
  0xa1   : > { %3009 = vmatprep.mubr.msk.f32.mxu1 %vm232_vm1, %v2594_v1 }
  0xa3   : > { %3036 = vmatmul.mubr.msk.f32.gmra.mxu0 %vm232_vm1, %v2629_v4 }
  0xa4   : > { %3010 = vmatmul.mubr.msk.f32.gmra.mxu1 %vm232_vm1, %v2595_v3 }
  0xd7   : > { %v2808_v5 = vpop.f32.mrf.mxu0 }
  0xd8   : > { %v2820_v6 = vpop.f32.mrf.mxu1 }
  0xd9   : > { %v351_v7 = vpop.f32.mrf.mxu0 }
  0xda   : > { %v391_v8 = vpop.f32.mrf.mxu1 }
  0xdb   : > { %v2811_v9 = vpop.f32.mrf.mxu0 }
  0xdc   : > { %v2823_v10 = vpop.f32.mrf.mxu1 }
  0xdd   : > { %v361_v11 = vpop.f32.mrf.mxu0 }
  0xde   : > { %v401_v12 = vpop.f32.mrf.mxu1 }
  0xdf   : > { %v2814_v13 = vpop.f32.mrf.mxu0 }
  0xe0   : > { %v2826_v14 = vpop.f32.mrf.mxu1 }
  0xe1   : > { %v371_v15 = vpop.f32.mrf.mxu0 }
  0xe2   : > { %v411_v16 = vpop.f32.mrf.mxu1 }
  0xe3   : > { %v2817_v17 = vpop.f32.mrf.mxu0 }
  0xe4   : > { %v2829_v18 = vpop.f32.mrf.mxu1 }
  0xe5   : > { %v381_v19 = vpop.f32.mrf.mxu0 }
  0xe6   : > { %v3649_v20 = vpop.f32.mrf.mxu1 }
  0xe7   : > { %v2860_v22 = vpop.f32.mrf.mxu0 }
  0xe8   : > { %v2834_v21 = vpop.f32.mrf.mxu1 }
  0xe9   : > { %v553_v23 = vadd.f32 %v2834_v21, %v2808_v5  ;;  %v761_v25 = vpop.f32.mrf.mxu0 }
  0xea   : > { %v547_v24 = vpop.f32.mrf.mxu1 }
  0xeb   : > { %v3651_v26 = vadd.f32 %v2860_v22, %v553_v23  ;;  %v548_v27 = vadd.f32 %v547_v24, %v351_v7  ;;  %v2863_v29 = vpop.f32.mrf.mxu0 }
  0xec   : > { %v2837_v28 = vpop.f32.mrf.mxu1 }
  0xed   : > { %v3653_v30 = vadd.f32 %v761_v25, %v548_v27  ;;  %v563_v31 = vadd.f32 %v2837_v28, %v2811_v9  ;;  %v771_v33 = vpop.f32.mrf.mxu0 }
  0xee   : > { %v557_v32 = vpop.f32.mrf.mxu1 }
  0xef   : > { %v3655_v34 = vadd.f32 %v2863_v29, %v563_v31  ;;  %v558_v35 = vadd.f32 %v557_v32, %v361_v11  ;;  %v2866_v37 = vpop.f32.mrf.mxu0 }
  0xf0   : > { %v2840_v36 = vpop.f32.mrf.mxu1 }
  0xf1   : > { %v3657_v38 = vadd.f32 %v771_v33, %v558_v35  ;;  %v573_v39 = vadd.f32 %v2840_v36, %v2814_v13  ;;  %v781_v41 = vpop.f32.mrf.mxu0 }
  0xf2   : > { %v567_v40 = vpop.f32.mrf.mxu1 }
  0xf3   : > { %v3659_v42 = vadd.f32 %v2866_v37, %v573_v39  ;;  %v568_v43 = vadd.f32 %v567_v40, %v371_v15  ;;  %v2869_v45 = vpop.f32.mrf.mxu0 }
  0xf4   : > { %v2843_v44 = vpop.f32.mrf.mxu1 }
  0xf5   : > { %v3661_v46 = vadd.f32 %v781_v41, %v568_v43  ;;  %v583_v47 = vadd.f32 %v2843_v44, %v2817_v17  ;;  %v791_v49 = vpop.f32.mrf.mxu0 }
  0xf6   : > { %v577_v48 = vpop.f32.mrf.mxu1 }
  0xf7   : > { %v3663_v50 = vadd.f32 %v2869_v45, %v583_v47  ;;  %v578_v51 = vadd.f32 %v577_v48, %v381_v19  ;;  %v2872_v53 = vpop.f32.mrf.mxu0 }
  0xf8   : > { %v2846_v52 = vpop.f32.mrf.mxu1 }
  0xf9   : > { %v3665_v54 = vadd.f32 %v791_v49, %v578_v51  ;;  %v593_v55 = vadd.f32 %v2846_v52, %v2820_v6  ;;  %v801_v57 = vpop.f32.mrf.mxu0 }
  0xfa   : > { %v587_v56 = vpop.f32.mrf.mxu1 }
  0xfb   : > { %v3667_v58 = vadd.f32 %v2872_v53, %v593_v55  ;;  %v588_v59 = vadd.f32 %v587_v56, %v391_v8  ;;  %v2875_v61 = vpop.f32.mrf.mxu0 }
  0xfc   : > { %v2849_v60 = vpop.f32.mrf.mxu1 }
  0xfd   : > { %v3669_v62 = vadd.f32 %v801_v57, %v588_v59  ;;  %v603_v63 = vadd.f32 %v2849_v60, %v2823_v10  ;;  %v811_v1 = vpop.f32.mrf.mxu0 }
  0xfe   : > { %v597_v0 = vpop.f32.mrf.mxu1 }
  0xff   : > { %v3671_v2 = vadd.f32 %v2875_v61, %v603_v63  ;;  %v598_v3 = vadd.f32 %v597_v0, %v401_v12  ;;  %v2878_v5 = vpop.f32.mrf.mxu0 }
 0x100   : > { %v2852_v4 = vpop.f32.mrf.mxu1 }
 0x101   : > { %v3673_v7 = vadd.f32 %v811_v1, %v598_v3  ;;  %v613_v6 = vadd.f32 %v2852_v4, %v2826_v14  ;;  %v821_v11 = vpop.f32.mrf.mxu0 }
 0x102   : > { %v607_v9 = vpop.f32.mrf.mxu1 }
 0x103   : > { %v3675_v13 = vadd.f32 %v2878_v5, %v613_v6  ;;  %v608_v8 = vadd.f32 %v607_v9, %v411_v16  ;;  %v2881_v17 = vpop.f32.mrf.mxu0 }
 0x104   : > { %v2855_v15 = vpop.f32.mrf.mxu1 }
 0x105   : > { %v3677_v19 = vadd.f32 %v821_v11, %v608_v8  ;;  %v623_v10 = vadd.f32 %v2855_v15, %v2829_v18  ;;  %v831_v22 = vpop.f32.mrf.mxu0 }
 0x106   : > { %v617_v21 = vpop.f32.mrf.mxu1 }
 0x107   : > { %3929 = vst [vmem:[#allocation2_spill] sm:$0xff] %v3677_v19  ;;  %v3679_v23 = vadd.f32 %v2881_v17, %v623_v10  ;;  %v618_v12 = vadd.f32 %v617_v21, %v3649_v20  ;;  %v2912_v25 = vpop.f32.mrf.mxu0 }
 0x108   : > { %v2886_v24 = vpop.f32.mrf.mxu1 }
 0x109   : > { %3930 = vst [vmem:[#allocation3_spill] sm:$0xff] %v3679_v23  ;;  %v3682_v27 = vadd.f32 %v831_v22, %v618_v12  ;;  %v3684_v28 = vpop.f32.mrf.mxu0  ;;  %v1074_v23 = vadd.f32 %v2886_v24, %v3651_v26 }
 0x10a   : > { %v994_v14 = vpop.f32.mrf.mxu1 }
 0x10b   : > { %3931 = vst [vmem:[#allocation4_spill] sm:$0xff] %v3682_v27  ;;  %v3686_v16 = vpop.f32.mrf.mxu0  ;;  %v1073_v19 = vadd.f32 %v994_v14, %v3653_v30 }
 0x10c   : > { %v2889_v29 = vpop.f32.mrf.mxu1 }
 0x10d   : > { %v3688_v32 = vpop.f32.mrf.mxu0  ;;  %v1303_v26 = vadd.f32 %v3684_v28, %v1073_v19 }
 0x10e   : > { %v1004_v31 = vpop.f32.mrf.mxu1 }
 0x10f   : > { %v3692_v33 = vpop.f32.mrf.mxu0  ;;  %v1075_v24 = vadd.f32 %v1004_v31, %v3657_v38 }
 0x110   : > { %v3690_v18 = vpop.f32.mrf.mxu1 }
 0x111   : > { %v3696_v20 = vpop.f32.mrf.mxu0  ;;  %v1078_v30 = vadd.f32 %v3690_v18, %v3659_v42  ;;  %v1305_v38 = vadd.f32 %v3688_v32, %v1075_v24  ;;  %v3806_v32 = vld [vmem:[%s3927_s2] ss:$0 sm:$0xff] }
 0x112   : > { %v3694_v35 = vpop.f32.mrf.mxu1 }
 0x113   : > { %v3700_v37 = vpop.f32.mrf.mxu0  ;;  %v1308_v42 = vadd.f32 %v3692_v33, %v1078_v30 }
 0x114   : > { %v3698_v36 = vpop.f32.mrf.mxu1 }
 0x115   : > { %v3704_v40 = vpop.f32.mrf.mxu0  ;;  %v1080_v31 = vadd.f32 %v3698_v36, %v3663_v50 }
 0x116   : > { %v3702_v39 = vpop.f32.mrf.mxu1 }
 0x117   : > { %v3708_v43 = vpop.f32.mrf.mxu0 }
 0x118   : > { %v3706_v41 = vpop.f32.mrf.mxu1 }
 0x119   : > { %v3712_v45 = vpop.f32.mrf.mxu0 }
 0x11a   : > { %v3710_v44 = vpop.f32.mrf.mxu1 }
 0x11b   : > { %v3716_v48 = vpop.f32.mrf.mxu0 }
 0x11c   : > { %v3714_v47 = vpop.f32.mrf.mxu1 }
 0x11d   : > { %v3720_v51 = vpop.f32.mrf.mxu0 }
 0x11e   : > { %v3718_v49 = vpop.f32.mrf.mxu1  ;;  %3932 = vst [vmem:[#allocation5_spill] sm:$0xff] %v3720_v51 }
 0x11f   : > { %v3724_v53 = vpop.f32.mrf.mxu0 }
 0x120   : > { %v3722_v52 = vpop.f32.mrf.mxu1  ;;  %3933 = vst [vmem:[#allocation6_spill] sm:$0xff] %v3724_v53 }
 0x121   : > { %v3728_v56 = vpop.f32.mrf.mxu0 }
 0x122   : > { %v3726_v55 = vpop.f32.mrf.mxu1  ;;  %3935 = vst [vmem:[#allocation8_spill] sm:$0xff] %v3728_v56 }
 0x123   : > { %3934 = vst [vmem:[#allocation7_spill] sm:$0xff] %v3726_v55  ;;  %v3732_v59 = vpop.f32.mrf.mxu0 }
 0x124   : > { %v3730_v57 = vpop.f32.mrf.mxu1  ;;  %3937 = vst [vmem:[#allocation10_spill] sm:$0xff] %v3732_v59 }
 0x125   : > { %3936 = vst [vmem:[#allocation9_spill] sm:$0xff] %v3730_v57  ;;  %v3736_v61 = vpop.f32.mrf.mxu0 }
 0x126   : > { %v3734_v60 = vpop.f32.mrf.mxu1  ;;  %3939 = vst [vmem:[#allocation12_spill] sm:$0xff] %v3736_v61 }
 0x127   : > { %3938 = vst [vmem:[#allocation11_spill] sm:$0xff] %v3734_v60  ;;  %v2964_v0 = vpop.f32.mrf.mxu0 }
 0x128   : > { %v2938_v63 = vpop.f32.mrf.mxu1 }
 0x129   : > { %v1687_v3 = vpop.f32.mrf.mxu0 }
 0x12a   : > { %v1454_v1 = vpop.f32.mrf.mxu1 }
 0x12b   : > { %v2967_v5 = vpop.f32.mrf.mxu0 }
 0x12c   : > { %v2941_v4 = vpop.f32.mrf.mxu1 }
 0x12d   : > { %v3738_v9 = vpop.f32.mrf.mxu0 }
 0x12e   : > { %v1464_v6 = vpop.f32.mrf.mxu1 }
 0x12f   : > { %v3740_v8 = vpop.f32.mrf.mxu0 }
 0x130   : > { %v2944_v11 = vpop.f32.mrf.mxu1 }
 0x131   : > { %v3742_v17 = vpop.f32.mrf.mxu0 }
 0x132   : > { %v1474_v15 = vpop.f32.mrf.mxu1 }
 0x133   : > { %v3746_v21 = vpop.f32.mrf.mxu0 }
 0x134   : > { %v3744_v10 = vpop.f32.mrf.mxu1 }
 0x135   : > { %v3750_v12 = vpop.f32.mrf.mxu0 }
 0x136   : > { %v3748_v22 = vpop.f32.mrf.mxu1  ;;  %3940 = vst [vmem:[#allocation13_spill] sm:$0xff] %v3750_v12  ;;  %v1076_v12 = vadd.f32 %v2889_v29, %v3655_v34 }
 0x137   : > { %v3754_v59 = vpop.f32.mrf.mxu0 }
 0x138   : > { %v3752_v61 = vpop.f32.mrf.mxu1  ;;  %3941 = vst [vmem:[#allocation14_spill] sm:$0xff] %v3754_v59  ;;  %v1306_v34 = vadd.f32 %v3686_v16, %v1076_v12 }
 0x139   : > { %v3758_v27 = vpop.f32.mrf.mxu0 }
 0x13a   : > { %v3756_v60 = vpop.f32.mrf.mxu1  ;;  %3942 = vst [vmem:[#allocation15_spill] sm:$0xff] %v3758_v27  ;;  %v1304_v27 = vadd.f32 %v2912_v25, %v1074_v23  ;;  %v1533_v23 = vadd.f32 %v1454_v1, %v1303_v26  ;;  %v1077_v25 = vadd.f32 %v3694_v35, %v3661_v46  ;;  %v1536_v28 = vadd.f32 %v2941_v4, %v1306_v34 }
 0x13b   : > { %v3763_v57 = vpop.f32.mrf.mxu0  ;;  %v1535_v1 = vadd.f32 %v1464_v6, %v1305_v38  ;;  %v1079_v35 = vadd.f32 %v3702_v39, %v3665_v54  ;;  %v1538_v26 = vadd.f32 %v2944_v11, %v1308_v42  ;;  %v1082_v4 = vadd.f32 %v3706_v41, %v3667_v58 }
 0x13c   : > { %v3761_v56 = vpop.f32.mrf.mxu1  ;;  %3944 = vst [vmem:[#allocation17_spill] sm:$0xff] %v3763_v57  ;;  %v1307_v46 = vadd.f32 %v3696_v20, %v1077_v25  ;;  %v1769_v50 = vadd.f32 %v2967_v5, %v1536_v28  ;;  %v1081_v58 = vadd.f32 %v3710_v44, %v3669_v62 }
 0x13d   : > { %3943 = vst [vmem:[#allocation16_spill] sm:$0xff] %v3761_v56  ;;  %v3768_v55 = vpop.f32.mrf.mxu0  ;;  %v1768_v6 = vadd.f32 %v3738_v9, %v1535_v1  ;;  %v1771_v41 = vadd.f32 %v3740_v8, %v1538_v26  ;;  %v1312_v38 = vadd.f32 %v3708_v43, %v1082_v4  ;;  %v1083_v43 = vadd.f32 %v3718_v49, %v3673_v7 }
 0x13e   : > { %v3766_v53 = vpop.f32.mrf.mxu1  ;;  %3945 = vst [vmem:[#allocation18_spill] sm:$0xff] %v3768_v55  ;;  %v1534_v55 = vadd.f32 %v2938_v63, %v1304_v27  ;;  %v1766_v63 = vadd.f32 %v1687_v3, %v1533_v23  ;;  %v1310_v3 = vadd.f32 %v3700_v37, %v1080_v31  ;;  %v1537_v20 = vadd.f32 %v1474_v15, %v1307_v46 }
 0x13f   : > { %v3773_v51 = vpop.f32.mrf.mxu0  ;;  %v1309_v37 = vadd.f32 %v3704_v40, %v1079_v35  ;;  %v1084_v40 = vadd.f32 %v3714_v47, %v3671_v2  ;;  %v1311_v31 = vadd.f32 %v3712_v45, %v1081_v58  ;;  %v1542_v2 = vadd.f32 %v3752_v61, %v1312_v38  ;;  %v3957_v38 = vld [vmem:[#allocation8_spill] sm:$0xff] }
 0x140   : > { %v3771_v59 = vpop.f32.mrf.mxu1  ;;  %3946 = vst [vmem:[#allocation19_spill] sm:$0xff] %v3773_v51  ;;  %v1767_v27 = vadd.f32 %v2964_v0, %v1534_v55  ;;  %v1540_v34 = vadd.f32 %v3744_v10, %v1310_v3  ;;  %v1770_v62 = vadd.f32 %v3742_v17, %v1537_v20  ;;  %v1086_v45 = vadd.f32 %v3722_v52, %v3675_v13 }
 0x141   : > { %v3778_v57 = vpop.f32.mrf.mxu0  ;;  %v1314_v1 = vadd.f32 %v3716_v48, %v1084_v40  ;;  %v1541_v7 = vadd.f32 %v3756_v60, %v1311_v31  ;;  %v3950_v48 = vld [vmem:[#allocation7_spill] sm:$0xff] }
 0x142   : > { %v3776_v56 = vpop.f32.mrf.mxu1  ;;  %v3956_v58 = vld [vmem:[#allocation15_spill] sm:$0xff] }
 0x143   : > { %v3787_v51 = vpop.f32.mrf.mxu0 }
 0x144   : > { %v3785_v14 = vpop.f32.mrf.mxu1  ;;  %v3952_v3 = vld [vmem:[#allocation16_spill] sm:$0xff] }
 0x145   : > { %v3794_v19 = vpop.f32.mrf.mxu0  ;;  %v1544_v4 = vadd.f32 %v3952_v3, %v1314_v1 }
 0x146   : > { %v3792_v29 = vpop.f32.mrf.mxu1 }
 0x147   : > { %v3016_v16 = vpop.f32.mrf.mxu0 }
 0x148   : > { %v2990_v18 = vpop.f32.mrf.mxu1 }
 0x149   : > { %v1997_v12 = vadd.f32 %v2990_v18, %v1767_v27  ;;  %v2147_v55 = vpop.f32.mrf.mxu0  ;;  %v1539_v27 = vadd.f32 %v3748_v22, %v1309_v37  ;;  %v1773_v18 = vadd.f32 %v3746_v21, %v1540_v34 }
 0x14a   : > { %v1917_v33 = vpop.f32.mrf.mxu1 }
 0x14b   : > { %v2227_v36 = vadd.f32 %v3016_v16, %v1997_v12  ;;  %v1996_v0 = vadd.f32 %v1917_v33, %v1766_v63  ;;  %v3019_v39 = vpop.f32.mrf.mxu0  ;;  %v3947_v12 = vld [vmem:[#allocation13_spill] sm:$0xff] }
 0x14c   : > { %v2993_v54 = vpop.f32.mrf.mxu1  ;;  %v1772_v46 = vadd.f32 %v3947_v12, %v1539_v27  ;;  %v3948_v33 = vld [vmem:[#allocation5_spill] sm:$0xff]  ;;  %v3964_v12 = vld [vmem:[#allocation19_spill] sm:$0xff] }
 0x14d   : > { %v2250_v5 = vadd.f32 %v3806_v32, %v2227_v36  ;;  %v2226_v11 = vadd.f32 %v2147_v55, %v1996_v0  ;;  %v1999_v24 = vadd.f32 %v2993_v54, %v1769_v50  ;;  %v2157_v30 = vpop.f32.mrf.mxu0  ;;  %v1313_v55 = vadd.f32 %v3948_v33, %v1083_v43  ;;  %v3949_v50 = vld [vmem:[#allocation2_spill] sm:$0xff] }
 0x14e   : > { %v1927_v15 = vpop.f32.mrf.mxu1  ;;  %v1085_v36 = vadd.f32 %v3950_v48, %v3949_v50  ;;  %v3951_v0 = vld [vmem:[#allocation14_spill] sm:$0xff] }
 0x14f   : > { %2267 = vst.msk [vmem:[%s3814_s29 + $0x8] sm:$0xff] %vm2265_vm2, %v2250_v5  ;;  %v2249_v9 = vadd.f32 %v3806_v32, %v2226_v11  ;;  %v2229_v23 = vadd.f32 %v3019_v39, %v1999_v24  ;;  %v1998_v25 = vadd.f32 %v1927_v15, %v1768_v6  ;;  %v3022_v8 = vpop.f32.mrf.mxu0  ;;  %v1775_v13 = vadd.f32 %v3951_v0, %v1542_v2  ;;  %v3953_v6 = vld [vmem:[#allocation6_spill] sm:$0xff]  ;;  %v3954_v11 = vld [vmem:[#allocation3_spill] sm:$0xff]  ;;  %v3955_v24 = vld [vmem:[#allocation9_spill] sm:$0xff] }
 0x150   : > { %v2996_v44 = vpop.f32.mrf.mxu1  ;;  %v1316_v5 = vadd.f32 %v3953_v6, %v1086_v45  ;;  %v1088_v37 = vadd.f32 %v3955_v24, %v3954_v11  ;;  %v1543_v34 = vadd.f32 %v3766_v53, %v1313_v55  ;;  %v1315_v40 = vadd.f32 %v3957_v38, %v1085_v36 }
 0x151   : > { %2266 = vst.msk [vmem:[%s3814_s29] sm:$0xff] %vm2265_vm2, %v2249_v9  ;;  %v2252_v10 = vadd.f32 %v3806_v32, %v2229_v23  ;;  %v2228_v28 = vadd.f32 %v2157_v30, %v1998_v25  ;;  %v2001_v42 = vadd.f32 %v2996_v44, %v1771_v41  ;;  %v2167_v17 = vpop.f32.mrf.mxu0  ;;  %v1774_v41 = vadd.f32 %v3956_v58, %v1541_v7  ;;  %v3959_v44 = vld [vmem:[#allocation11_spill] sm:$0xff] }
 0x152   : > { %v1937_v47 = vpop.f32.mrf.mxu1  ;;  %v1546_v27 = vadd.f32 %v3771_v59, %v1316_v5 }
 0x153   : > { %2269 = vst.msk [vmem:[%s3814_s29 + $0x18] sm:$0xff] %vm2265_vm2, %v2252_v10  ;;  %v2251_v22 = vadd.f32 %v3806_v32, %v2228_v28  ;;  %v2231_v16 = vadd.f32 %v3022_v8, %v2001_v42  ;;  %v2000_v63 = vadd.f32 %v1937_v47, %v1770_v62  ;;  %v3025_v61 = vpop.f32.mrf.mxu0  ;;  %v3958_v62 = vld [vmem:[#allocation4_spill] sm:$0xff]  ;;  %v3960_v42 = vld [vmem:[#allocation17_spill] sm:$0xff]  ;;  %v3961_v47 = vld [vmem:[#allocation10_spill] sm:$0xff] }
 0x154   : > { %v2999_v49 = vpop.f32.mrf.mxu1  ;;  %v1087_v8 = vadd.f32 %v3959_v44, %v3958_v62  ;;  %v1777_v31 = vadd.f32 %v3960_v42, %v1544_v4 }
 0x155   : > { %2268 = vst.msk [vmem:[%s3814_s29 + $0x10] sm:$0xff] %vm2265_vm2, %v2251_v22  ;;  %v2254_v21 = vadd.f32 %v3806_v32, %v2231_v16  ;;  %v2230_v35 = vadd.f32 %v2167_v17, %v2000_v63  ;;  %v2003_v26 = vadd.f32 %v2999_v49, %v1773_v18  ;;  %v2177_v60 = vpop.f32.mrf.mxu0  ;;  %v1318_v17 = vadd.f32 %v3961_v47, %v1088_v37  ;;  %v3962_v63 = vld [vmem:[#allocation18_spill] sm:$0xff]  ;;  %v3963_v49 = vld [vmem:[#allocation12_spill] sm:$0xff] }
 0x156   : > { %v1947_v52 = vpop.f32.mrf.mxu1  ;;  %v1545_v18 = vadd.f32 %v3776_v56, %v1315_v40  ;;  %v1776_v1 = vadd.f32 %v3962_v63, %v1543_v34 }
 0x157   : > { %2271 = vst.msk [vmem:[%s3814_s29 + $0x28] sm:$0xff] %vm2265_vm2, %v2254_v21  ;;  %v2253_v20 = vadd.f32 %v3806_v32, %v2230_v35  ;;  %v2233_v54 = vadd.f32 %v3025_v61, %v2003_v26  ;;  %v2002_v39 = vadd.f32 %v1947_v52, %v1772_v46  ;;  %v3028_v30 = vpop.f32.mrf.mxu0  ;;  %v1317_v61 = vadd.f32 %v3963_v49, %v1087_v8 }
 0x158   : > { %v3002_v15 = vpop.f32.mrf.mxu1  ;;  %v1779_v46 = vadd.f32 %v3964_v12, %v1546_v27  ;;  %v1548_v26 = vadd.f32 %v3785_v14, %v1318_v17  ;;  %v1778_v50 = vadd.f32 %v3778_v57, %v1545_v18 }
 0x159   : > { %2270 = vst.msk [vmem:[%s3814_s29 + $0x20] sm:$0xff] %vm2265_vm2, %v2253_v20  ;;  %v2256_v9 = vadd.f32 %v3806_v32, %v2233_v54  ;;  %v2232_v23 = vadd.f32 %v2177_v60, %v2002_v39  ;;  %v2005_v25 = vadd.f32 %v3002_v15, %v1775_v13  ;;  %v2187_v28 = vpop.f32.mrf.mxu0  ;;  %v1547_v0 = vadd.f32 %v3792_v29, %v1317_v61 }
 0x15a   : > { %v1957_v10 = vpop.f32.mrf.mxu1  ;;  %v1781_v4 = vadd.f32 %v3787_v51, %v1548_v26 }
 0x15b   : > { %2273 = vst.msk [vmem:[%s3814_s29 + $0x38] sm:$0xff] %vm2265_vm2, %v2256_v9  ;;  %v2255_v53 = vadd.f32 %v3806_v32, %v2232_v23  ;;  %v2235_v43 = vadd.f32 %v3028_v30, %v2005_v25  ;;  %v2004_v2 = vadd.f32 %v1957_v10, %v1774_v41  ;;  %v3031_v16 = vpop.f32.mrf.mxu0  ;;  %v1780_v6 = vadd.f32 %v3794_v19, %v1547_v0 }
 0x15c   : > { %v3005_v22 = vpop.f32.mrf.mxu1 }
 0x15d   : > { %2272 = vst.msk [vmem:[%s3814_s29 + $0x30] sm:$0xff] %vm2265_vm2, %v2255_v53  ;;  %v2258_v59 = vadd.f32 %v3806_v32, %v2235_v43  ;;  %v2234_v45 = vadd.f32 %v2187_v28, %v2004_v2  ;;  %v2007_v7 = vadd.f32 %v3005_v22, %v1777_v31  ;;  %v2197_v35 = vpop.f32.mrf.mxu0 }
 0x15e   : > { %v1967_v21 = vpop.f32.mrf.mxu1 }
 0x15f   : > { %2275 = vst.msk [vmem:[%s3814_s29 + $0x48] sm:$0xff] %vm2265_vm2, %v2258_v59  ;;  %v2257_v56 = vadd.f32 %v3806_v32, %v2234_v45  ;;  %v2237_v33 = vadd.f32 %v3031_v16, %v2007_v7  ;;  %v2006_v55 = vadd.f32 %v1967_v21, %v1776_v1  ;;  %v3034_v36 = vpop.f32.mrf.mxu0 }
 0x160   : > { %v3008_v48 = vpop.f32.mrf.mxu1 }
 0x161   : > { %2274 = vst.msk [vmem:[%s3814_s29 + $0x40] sm:$0xff] %vm2265_vm2, %v2257_v56  ;;  %v2260_v13 = vadd.f32 %v3806_v32, %v2237_v33  ;;  %v2236_v52 = vadd.f32 %v2197_v35, %v2006_v55  ;;  %v2009_v14 = vadd.f32 %v3008_v48, %v1779_v46  ;;  %v2207_v3 = vpop.f32.mrf.mxu0 }
 0x162   : > { %v1977_v60 = vpop.f32.mrf.mxu1 }
 0x163   : > { %2277 = vst.msk [vmem:[%s3814_s29 + $0x58] sm:$0xff] %vm2265_vm2, %v2260_v13  ;;  %v2259_v57 = vadd.f32 %v3806_v32, %v2236_v52  ;;  %v2239_v20 = vadd.f32 %v3034_v36, %v2009_v14  ;;  %v2008_v54 = vadd.f32 %v1977_v60, %v1778_v50  ;;  %v3037_v29 = vpop.f32.mrf.mxu0 }
 0x164   : > { %v3011_v39 = vpop.f32.mrf.mxu1 }
 0x165   : > { %2276 = vst.msk [vmem:[%s3814_s29 + $0x50] sm:$0xff] %vm2265_vm2, %v2259_v57  ;;  %v2262_v5 = vadd.f32 %v3806_v32, %v2239_v20  ;;  %v2238_v11 = vadd.f32 %v2207_v3, %v2008_v54  ;;  %v2011_v24 = vadd.f32 %v3011_v39, %v1781_v4  ;;  %v2217_v15 = vpop.f32.mrf.mxu0 }
 0x166   : > { %v1987_v51 = vpop.f32.mrf.mxu1 }
 0x167   : > { %2279 = vst.msk [vmem:[%s3814_s29 + $0x68] sm:$0xff] %vm2265_vm2, %v2262_v5  ;;  %v2261_v37 = vadd.f32 %v3806_v32, %v2238_v11  ;;  %v2241_v58 = vadd.f32 %v3037_v29, %v2011_v24  ;;  %v2010_v41 = vadd.f32 %v1987_v51, %v1780_v6 }
 0x169   : > { %2278 = vst.msk [vmem:[%s3814_s29 + $0x60] sm:$0xff] %vm2265_vm2, %v2261_v37  ;;  %v2264_v30 = vadd.f32 %v3806_v32, %v2241_v58  ;;  %v2240_v19 = vadd.f32 %v2217_v15, %v2010_v41 }
 0x16b   : > { %2281 = vst.msk [vmem:[%s3814_s29 + $0x78] sm:$0xff] %vm2265_vm2, %v2264_v30  ;;  %v2263_v34 = vadd.f32 %v3806_v32, %v2240_v19 }
 0x16d   : > { %2280 = vst.msk [vmem:[%s3814_s29 + $0x70] sm:$0xff] %vm2265_vm2, %v2263_v34 }
 0x16e PF: > { %s13_s16 = sadd.s32 1, %s3119_s16   ;;  %s3965_s12 = smov %s3111_s14 }
 0x16f   : > { %p10_p7 = scmp.ge.s32.totalorder %s13_s16, 6   ;;  %s3966_s13 = smov %s3115_s15 }
 0x170   : > { %s3967_s14 = smov %s3970_s17  ;;  %s3968_s15 = smov %s3974_s18 }
 0x171   :  { %12 = sbr.rel (!%p10_p7) target bundleno = 3 (0x3), region = 73 }

</bundles_post_ra>
